<compile_context>
chip_gen: v7x
topology: tpu7x:2x2x1
jax: 0.10.0
libtpu: 0.0.40
codegen_flags: <defaults>
</compile_context>

<pallas_src>
import functools

import jax
import jax.numpy as jnp
from jax.experimental import pallas as pl
from jax.experimental.pallas import tpu as pltpu


def _round_up(n: int, m: int) -> int:
    return (n + m - 1) // m * m


def _mlp_kernel(x_ref, w_ref, b_ref, out_ref, *, in_dim_p, action_dim):
    # x_ref:   (TB, in_dim_p)    f32  (batch tile, streamed over the grid)
    # w_ref:   (3, P, P)         f32  (zero-padded, grid-invariant block)
    # b_ref:   (3, 1, P)         f32  (zero-padded, grid-invariant block)
    # out_ref: (TB, action_dim)  f32  (real-width output block)
    x = x_ref[...]

    # Layer 1: Linear(2*obs, hidden) + Tanh.  Only the first in_dim_p rows of
    # the padded weight slab are real; padded x columns are zero.
    h = jnp.tanh(
        jnp.dot(x, w_ref[0, :in_dim_p, :], preferred_element_type=jnp.float32)
        + b_ref[0]
    )
    # Layer 2: Linear(hidden, hidden) + Tanh.  Padded columns of h are
    # tanh(0) == 0 and padded rows of w2 are 0, so padding is inert.
    h = jnp.tanh(
        jnp.dot(h, w_ref[1], preferred_element_type=jnp.float32) + b_ref[1]
    )
    # Layer 3: Linear(hidden, action_dim).  Slice the real output columns and
    # store the narrow block (masked lane store; far cheaper than the padded
    # HBM writeback it replaces).
    y = jnp.dot(h, w_ref[2], preferred_element_type=jnp.float32) + b_ref[2]
    out_ref[...] = y[:, :action_dim].astype(out_ref.dtype)


def pack_params(w1, b1, w2, b2, w3, b3):
    """Pack the 6 parameter tensors into two lane-aligned, zero-padded slabs.

    Call once (or cache) -- the packed slabs are what the jitted forward
    consumes, so per-call packing overhead is off the hot path.

    Returns (w_packed: (3, P, P), b_packed: (3, 1, P), action_dim).
    """
    in_dim, hidden = w1.shape
    action_dim = w3.shape[1]
    P = _round_up(max(in_dim, hidden, action_dim), 128)

    w_packed = jnp.zeros((3, P, P), jnp.float32)
    w_packed = w_packed.at[0, :in_dim, :hidden].set(w1)
    w_packed = w_packed.at[1, :hidden, :hidden].set(w2)
    w_packed = w_packed.at[2, :hidden, :action_dim].set(w3)

    b_packed = jnp.zeros((3, 1, P), jnp.float32)
    b_packed = b_packed.at[0, :, :hidden].set(b1.reshape(1, -1))
    b_packed = b_packed.at[1, :, :hidden].set(b2.reshape(1, -1))
    b_packed = b_packed.at[2, :, :action_dim].set(b3.reshape(1, -1))

    return w_packed, b_packed, action_dim


@functools.partial(jax.jit, static_argnames=("action_dim", "block_b"))
def linear_inverse_dynamic_packed(x, w_packed, b_packed, *, action_dim,
                                  block_b=4096):
    """Forward pass of LinearInverseDynamic from pre-packed parameter slabs.

    x:        (B, 2*observation_dim) float32
    w_packed: (3, P, P) float32   (from pack_params)
    b_packed: (3, 1, P) float32   (from pack_params)
    returns:  (B, action_dim) float32
    """
    B, in_dim = x.shape
    P = w_packed.shape[-1]
    in_dim_p = _round_up(in_dim, 8)

    # Pad x's feature dim to a sublane multiple (no-op when in_dim % 8 == 0).
    x_p = x if in_dim_p == in_dim else jnp.pad(
        x, ((0, 0), (0, in_dim_p - in_dim)))

    # Batch tile: large enough to amortize per-grid-step overhead, but chosen
    # so the grid has >= 2 steps (lets the "parallel" batch axis shard across
    # both TensorCores on v7x; harmless on 1-TC v5e/v6e).
    tb = min(block_b, _round_up(pl.cdiv(B, 2), 8))
    grid = (pl.cdiv(B, tb),)

    hidden = P  # padded layer width actually processed by the MXU
    cost = pl.CostEstimate(
        flops=2 * B * (in_dim_p * hidden + hidden * hidden
                       + hidden * hidden),
        transcendentals=2 * B * hidden,
        bytes_accessed=4 * (x_p.size + B * action_dim
                            + w_packed.size + b_packed.size),
    )

    out = pl.pallas_call(
        functools.partial(_mlp_kernel, in_dim_p=in_dim_p,
                          action_dim=action_dim),
        out_shape=jax.ShapeDtypeStruct((B, action_dim), x.dtype),
        grid_spec=pltpu.PrefetchScalarGridSpec(
            num_scalar_prefetch=0,
            grid=grid,
            in_specs=[
                # x tiles stream over the batch grid axis (double-buffered).
                pl.BlockSpec((tb, in_dim_p), lambda i: (i, 0)),
                # Packed params: grid-invariant blocks -> fetched once,
                # VMEM-resident across all batch tiles.
                pl.BlockSpec((3, P, P), lambda i: (0, 0, 0)),
                pl.BlockSpec((3, 1, P), lambda i: (0, 0, 0)),
            ],
            # Real-width output block: last dim equals the full array dim, so
            # the (tb, action_dim) block shape is legal even for action_dim=8.
            out_specs=pl.BlockSpec((tb, action_dim), lambda i: (i, 0)),
        ),
        compiler_params=pltpu.CompilerParams(
            dimension_semantics=("parallel",),
        ),
        cost_estimate=cost,
    )(x_p, w_packed, b_packed)

    return out


def linear_inverse_dynamic(x, w1, b1, w2, b2, w3, b3, *, block_b=4096):
    """Convenience wrapper: packs params then runs the kernel.

    Prefer pack_params() once + linear_inverse_dynamic_packed() in a loop to
    keep parameter packing off the per-call hot path.
    """
    w_packed, b_packed, action_dim = pack_params(w1, b1, w2, b2, w3, b3)
    return linear_inverse_dynamic_packed(
        x, w_packed, b_packed, action_dim=action_dim, block_b=block_b)


def _init_linear(key, fan_in, fan_out):
    """PyTorch-style init: U(-1/sqrt(fan_in), 1/sqrt(fan_in)).

    Weight is (fan_in, fan_out) (transposed vs. PyTorch); bias is (1, fan_out).
    """
    kw, kb = jax.random.split(key)
    bound = 1.0 / jnp.sqrt(jnp.float32(fan_in))
    w = jax.random.uniform(kw, (fan_in, fan_out), jnp.float32, -bound, bound)
    b = jax.random.uniform(kb, (1, fan_out), jnp.float32, -bound, bound)
    return w, b


if __name__ == "__main__":
    # Module hyperparameters (small, consistent with the forward pass).
    observation_dim = 16
    action_dim = 8
    hidden_dim = 32
    batch = 64

    key = jax.random.PRNGKey(0)
    kx, kx2, k1, k2, k3 = jax.random.split(key, 5)

    # Input: (B, 2*observation_dim), as consumed by the first Linear.
    x = jax.random.normal(kx, (batch, 2 * observation_dim), jnp.float32)

    # Deterministic parameter init (shapes from __init__).
    w1, b1 = _init_linear(k1, 2 * observation_dim, hidden_dim)
    w2, b2 = _init_linear(k2, hidden_dim, hidden_dim)
    w3, b3 = _init_linear(k3, hidden_dim, action_dim)

    # Pure-JAX reference for correctness.
    def ref_fwd(xi):
        h = jnp.tanh(xi @ w1 + b1)
        h = jnp.tanh(h @ w2 + b2)
        return h @ w3 + b3

    ref = ref_fwd(x)

    # Pack parameters once (off the hot path), reuse across calls.
    w_packed, b_packed, adim = pack_params(w1, b1, w2, b2, w3, b3)

    # Default tile path: B=64 -> tb=32, grid=2 (exercises megacore sharding).
    out = linear_inverse_dynamic_packed(x, w_packed, b_packed, action_dim=adim)
    out = jax.block_until_ready(out)
    assert out.shape == (batch, action_dim)
    assert jnp.allclose(out, ref, atol=1e-5, rtol=1e-5)

    # Small-tile path: tb=16, grid=4 (exercises BlockSpec pipelining).
    out2 = linear_inverse_dynamic_packed(x, w_packed, b_packed,
                                         action_dim=adim, block_b=16)
    out2 = jax.block_until_ready(out2)
    assert out2.shape == (batch, action_dim)
    assert jnp.allclose(out2, ref, atol=1e-5, rtol=1e-5)

    # Non-divisible batch path: partial final tile (OOB rows dropped on write).
    x_odd = jax.random.normal(kx2, (50, 2 * observation_dim), jnp.float32)
    out3 = linear_inverse_dynamic(x_odd, w1, b1, w2, b2, w3, b3)
    out3 = jax.block_until_ready(out3)
    assert out3.shape == (50, action_dim)
    assert jnp.allclose(out3, ref_fwd(x_odd), atol=1e-5, rtol=1e-5)

    print("KERNEL_OK")
</pallas_src>

<mosaic_0001>
module attributes {stable_mosaic.version = 11 : i64} {
  func.func @_mlp_kernel(%arg0: i32, %arg1: memref<32x32xf32, #tpu.memory_space<vmem>>, %arg2: memref<3x128x128xf32, #tpu.memory_space<vmem>>, %arg3: memref<3x1x128xf32, #tpu.memory_space<vmem>>, %arg4: memref<32x8xf32, #tpu.memory_space<vmem>>) attributes {dimension_semantics = [#tpu.dimension_semantics<parallel>], iteration_bounds = array<i64: 2>, scalar_prefetch = 0 : i64, scratch_operands = 0 : i64, tpu.core_type = #tpu.core_type<tc>, window_params = [{transform_indices = @transform_0, window_bounds = array<i64: 32, 32>}, {pipeline_mode = #tpu.pipeline_mode<synchronous>, transform_indices = @transform_1, window_bounds = array<i64: 3, 128, 128>}, {pipeline_mode = #tpu.pipeline_mode<synchronous>, transform_indices = @transform_2, window_bounds = array<i64: 3, 1, 128>}, {transform_indices = @transform_3, window_bounds = array<i64: 32, 8>}]} {
    %c0 = arith.constant 0 : index
    %c0_0 = arith.constant 0 : index
    %0 = vector.load %arg1[%c0, %c0_0] : memref<32x32xf32, #tpu.memory_space<vmem>>, vector<32x32xf32>
    %c0_1 = arith.constant 0 : index
    %c0_2 = arith.constant 0 : index
    %c0_3 = arith.constant 0 : index
    %1 = vector.load %arg2[%c0_1, %c0_2, %c0_3] : memref<3x128x128xf32, #tpu.memory_space<vmem>>, vector<1x32x128xf32>
    %2 = vector.shape_cast %1 : vector<1x32x128xf32> to vector<32x128xf32>
    %cst = arith.constant dense<0.000000e+00> : vector<32x128xf32>
    %3 = tpu.matmul %0, %2, %cst {dimension_numbers = #tpu.dot_dimension_numbers<[1], [0], [0], [1], [0, 0, 1, 1], [], []>} : vector<32x32xf32>, vector<32x128xf32>, vector<32x128xf32> -> vector<32x128xf32>
    %c0_4 = arith.constant 0 : index
    %c0_5 = arith.constant 0 : index
    %c0_6 = arith.constant 0 : index
    %4 = vector.load %arg3[%c0_4, %c0_5, %c0_6] : memref<3x1x128xf32, #tpu.memory_space<vmem>>, vector<1x1x128xf32>
    %5 = vector.shape_cast %4 : vector<1x1x128xf32> to vector<1x128xf32>
    %6 = vector.broadcast %5 : vector<1x128xf32> to vector<32x128xf32>
    %7 = arith.addf %3, %6 : vector<32x128xf32>
    %8 = math.tanh %7 : vector<32x128xf32>
    %c1 = arith.constant 1 : index
    %c0_7 = arith.constant 0 : index
    %c0_8 = arith.constant 0 : index
    %9 = vector.load %arg2[%c1, %c0_7, %c0_8] : memref<3x128x128xf32, #tpu.memory_space<vmem>>, vector<1x128x128xf32>
    %10 = vector.shape_cast %9 : vector<1x128x128xf32> to vector<128x128xf32>
    %cst_9 = arith.constant dense<0.000000e+00> : vector<32x128xf32>
    %11 = tpu.matmul %8, %10, %cst_9 {dimension_numbers = #tpu.dot_dimension_numbers<[1], [0], [0], [1], [0, 0, 1, 1], [], []>} : vector<32x128xf32>, vector<128x128xf32>, vector<32x128xf32> -> vector<32x128xf32>
    %c1_10 = arith.constant 1 : index
    %c0_11 = arith.constant 0 : index
    %c0_12 = arith.constant 0 : index
    %12 = vector.load %arg3[%c1_10, %c0_11, %c0_12] : memref<3x1x128xf32, #tpu.memory_space<vmem>>, vector<1x1x128xf32>
    %13 = vector.shape_cast %12 : vector<1x1x128xf32> to vector<1x128xf32>
    %14 = vector.broadcast %13 : vector<1x128xf32> to vector<32x128xf32>
    %15 = arith.addf %11, %14 : vector<32x128xf32>
    %16 = math.tanh %15 : vector<32x128xf32>
    %c2 = arith.constant 2 : index
    %c0_13 = arith.constant 0 : index
    %c0_14 = arith.constant 0 : index
    %17 = vector.load %arg2[%c2, %c0_13, %c0_14] : memref<3x128x128xf32, #tpu.memory_space<vmem>>, vector<1x128x128xf32>
    %18 = vector.shape_cast %17 : vector<1x128x128xf32> to vector<128x128xf32>
    %cst_15 = arith.constant dense<0.000000e+00> : vector<32x128xf32>
    %19 = tpu.matmul %16, %18, %cst_15 {dimension_numbers = #tpu.dot_dimension_numbers<[1], [0], [0], [1], [0, 0, 1, 1], [], []>} : vector<32x128xf32>, vector<128x128xf32>, vector<32x128xf32> -> vector<32x128xf32>
    %c2_16 = arith.constant 2 : index
    %c0_17 = arith.constant 0 : index
    %c0_18 = arith.constant 0 : index
    %20 = vector.load %arg3[%c2_16, %c0_17, %c0_18] : memref<3x1x128xf32, #tpu.memory_space<vmem>>, vector<1x1x128xf32>
    %21 = vector.shape_cast %20 : vector<1x1x128xf32> to vector<1x128xf32>
    %22 = vector.broadcast %21 : vector<1x128xf32> to vector<32x128xf32>
    %23 = arith.addf %19, %22 : vector<32x128xf32>
    %24 = vector.extract_strided_slice %23 {offsets = [0, 0], sizes = [32, 8], strides = [1, 1]} : vector<32x128xf32> to vector<32x8xf32>
    %c0_19 = arith.constant 0 : index
    %c0_20 = arith.constant 0 : index
    %25 = vector.load %arg4[%c0_19, %c0_20] : memref<32x8xf32, #tpu.memory_space<vmem>>, vector<32x8xf32>
    tpu.vector_store %arg4[%c0_19, %c0_20], %24 {strides = array<i32>} : memref<32x8xf32, #tpu.memory_space<vmem>>, vector<32x8xf32>,
    return
  }
  func.func @transform_0(%arg0: i32) -> (i32, i32) {
    %c0_i32 = arith.constant 0 : i32
    %c0_i32_0 = arith.constant 0 : i32
    return %arg0, %c0_i32 : i32, i32
  }
  func.func @transform_1(%arg0: i32) -> (i32, i32, i32) {
    %c0_i32 = arith.constant 0 : i32
    %c0_i32_0 = arith.constant 0 : i32
    %c0_i32_1 = arith.constant 0 : i32
    %c0_i32_2 = arith.constant 0 : i32
    return %c0_i32, %c0_i32_0, %c0_i32_1 : i32, i32, i32
  }
  func.func @transform_2(%arg0: i32) -> (i32, i32, i32) {
    %c0_i32 = arith.constant 0 : i32
    %c0_i32_0 = arith.constant 0 : i32
    %c0_i32_1 = arith.constant 0 : i32
    %c0_i32_2 = arith.constant 0 : i32
    return %c0_i32, %c0_i32_0, %c0_i32_1 : i32, i32, i32
  }
  func.func @transform_3(%arg0: i32) -> (i32, i32) {
    %c0_i32 = arith.constant 0 : i32
    %c0_i32_0 = arith.constant 0 : i32
    return %arg0, %c0_i32 : i32, i32
  }
}

</mosaic_0001>

<bundles_post_ra>
// kernel: linear_inverse_dynamic_packed.1
= control target key start
LH: loop header
LB: loop body
LE: loop exit
PB: predicated region body
PF: predicated region fallthrough
CT: control target
= control target key end

     0   :  { %8 = vsyncpa [#allocation3], 0  ;;  %s935_s12 = smov 0   ;;  %s1020_s0 = inlined_call_operand.vmem [shape: f32[64,32], index: 0, kind: input, shape index: {}]   ;;  %s1021_s1 = inlined_call_operand.hbm [shape: f32[3,128,128], index: 1, kind: input, shape index: {}]   ;;  %s1022_s2 = inlined_call_operand.vmem [shape: f32[3,1,128], index: 2, kind: input, shape index: {}]   ;;  %s1023_s3 = inlined_call_operand.vmem [shape: f32[64,8], index: 3, kind: output, shape index: {}]  }
   0x1 LB: > { %s603_s13 = sadd.s32 4294967295, %s910_s12   ;;  %p605_p0 = scmp.ge.s32.totalorder %s910_s12, 1  ;;  %s910_s12 = sphi %s935_s12, %s14_s12  }
   0x2   : > { %p113_p1 = scmp.lt.s32.totalorder %s910_s12, 3  ;;  %s912_s14 = smov [#allocation2]  }
   0x3   : > { %s125_s15 = sshll.u32 %s912_s14, 4  ;;  %p949_p3 = scmp.eq.s32.totalorder %s603_s13, 0  ;;  %s126_s15 = int_to_ptr.vmem [resolvable:$true] %s125_s15 }
   0x4   : > { %p943_p2 = pnand %p605_p0, %p113_p1  ;;  %s872_s21 = scalar_lea.hbm %s1021_s1, 6144 }
   0x5   : > { %s1028_s17 = scalar_select %p949_p3, 1, 0 }
   0x6   : > { %s1027_s16 = scalar_select %p943_p2, 1, 0 }
   0x7   : > { %p839_p4 = pneg %p943_p2  ;;  %p873_p6 = scmp.ne.s32.totalorder %s1021_s1, %s872_s21 }
   0x8   : > { %p879_p10 = scmp.lt.u32.totalorder %s872_s21, %s1021_s1 }
   0x9   : > { %p957_p5 = pnand %p949_p3, %p839_p4 }
   0xb   : > { %p874_p7 = pneg %p957_p5 }
   0xd   : > { %p875_p8 = pnand %p874_p7, %p873_p6 }
   0xf   : > { %p876_p9 = pneg %p875_p8 }
  0x11   : > { %p881_p11 = pnand %p879_p10, %p876_p9 }
  0x13   : > { %884 = shalt.err (!%p881_p11)
}
  0x14   : > { %s885_s26 = scalar_lea.vmem %s126_s15, 6144  ;;  %p893_p1 = scmp.lt.s32.totalorder %s126_s15, %s126_s15 }
  0x15   : > { %p886_p12 = scmp.ne.s32.totalorder %s126_s15, %s885_s26  ;;  %p894_p4 = scmp.lt.s32.totalorder %s885_s26, %s885_s26 }
  0x17   : > { %p888_p13 = pnand %p886_p12, %p874_p7  ;;  %p895_p3 = por %p894_p4, %p893_p1 }
  0x19   : > { %p889_p0 = pneg %p888_p13 }
  0x1b   : > { %p896_p2 = pnand %p895_p3, %p889_p0 }
  0x1d   : > { %899 = shalt.err (!%p896_p2)
}
  0x1e   : > { %s913_s27 = smov 128   ;;  %s914_s28 = smov 8  }
  0x1f   : > { %842 = dma.hbm_to_vmem [thread:$0]  (!%p957_p5), %s1021_s1, 6144, %s126_s15, [#allocation3], %s913_s27, %s913_s27, %s914_s28  }
  0x20   : > { %p1030_p6 = scmp.ne.s32.totalorder %s1027_s16, 0 }
  0x21   : > { %p1031_p8 = scmp.ne.s32.totalorder (!%p1030_p6), %s1028_s17, 0 }
  0x22   : > { %153 = sbr.rel (%p1030_p6) target bundleno = 727 (0x2d7), region = 32 }
  0x29   : > { %905 = dma.done.wait (%p1031_p8), [#allocation3], 6144  }
  0x2a   : > { %907 = vsyncadd (%p1031_p8), [#allocation3], 4294961152  ;;  %s610_s4 = sshll.u32 %s603_s13, 2  ;;  %vm204_vm0 = vcmask 261120   ;;  %v193_v0 = vld [vmem:[#allocation2] sm:$0xff]  ;;  %v194_v1 = vld [vmem:[#allocation2 + $0x8] sm:$0xff] }
  0x2b   : > { %p178_p2 = scmp.lt.s32.totalorder %s610_s4, 7  ;;  %v195_v2 = vld [vmem:[#allocation2 + $0x10] sm:$0xff]  ;;  %v763_v3 = vpack.c.bf16 %v194_v1, %v193_v0  ;;  %v196_v4 = vld [vmem:[#allocation2 + $0x18] sm:$0xff]  ;;  %v307_v7 = vld [vmem:[#allocation2 + $0x80] sm:$0xff]  ;;  %vm530_vm1 = vcmask 64512  }
  0x2c   : > { %v767_v6 = vpack.c.bf16 %v196_v4, %v195_v2  ;;  %v308_v8 = vld [vmem:[#allocation2 + $0x88] sm:$0xff]  ;;  %v309_v9 = vld [vmem:[#allocation2 + $0x90] sm:$0xff]  ;;  %v310_v10 = vld [vmem:[#allocation2 + $0x98] sm:$0xff] }
  0x2d   : > { %s1033_s4 = smov (!%p178_p2, %s610_s4), 7  ;;  %764 = vmatprep.subr.bf16.mxu0 %v763_v3  ;;  %v771_v11 = vpack.c.bf16 %v308_v8, %v307_v7  ;;  %v775_v12 = vpack.c.bf16 %v310_v10, %v309_v9  ;;  %v311_v13 = vld [vmem:[#allocation2 + $0xa0] sm:$0xff]  ;;  %v312_v14 = vld [vmem:[#allocation2 + $0xa8] sm:$0xff]  ;;  %v313_v18 = vld [vmem:[#allocation2 + $0xb0] sm:$0xff] }
  0x2e   : > { %s611_s5 = sshll.u32 %s1033_s4, 3  ;;  %766 = vmatpush3.bf16.msra.mxu0 %v763_v3  ;;  %v779_v16 = vpack.c.bf16 %v312_v14, %v311_v13  ;;  %v314_v19 = vld [vmem:[#allocation2 + $0xb8] sm:$0xff]  ;;  %v315_v22 = vld [vmem:[#allocation2 + $0xc0] sm:$0xff]  ;;  %v316_v23 = vld [vmem:[#allocation2 + $0xc8] sm:$0xff] }
  0x2f   : > { %s993_s8 = scalar_lea.vmem %s1020_s0, %s611_s5  ;;  %768 = vmatprep.subr.bf16.mxu0 %v767_v6  ;;  %772 = vmatprep.subr.bf16.mxu1 %v771_v11  ;;  %v783_v21 = vpack.c.bf16 %v314_v19, %v313_v18  ;;  %v787_v24 = vpack.c.bf16 %v316_v23, %v315_v22  ;;  %v317_v25 = vld [vmem:[#allocation2 + $0xd0] sm:$0xff]  ;;  %v318_v26 = vld [vmem:[#allocation2 + $0xd8] sm:$0xff]  ;;  %v319_v28 = vld [vmem:[#allocation2 + $0xe0] sm:$0xff]  ;;  %s187_s18 = scalar_lea.vmem %s1023_s3, %s611_s5 }
  0x30   : > { %v189_v5 = vld [vmem:[%s993_s8] sm:$0xff]  ;;  %774 = vmatpush3.bf16.msra.mxu1 %v771_v11  ;;  %v190_v15 = vld [vmem:[%s993_s8 + $0x8] sm:$0xff]  ;;  %v191_v17 = vld [vmem:[%s993_s8 + $0x10] sm:$0xff]  ;;  %v791_v27 = vpack.c.bf16 %v318_v26, %v317_v25 }
  0x31   : > { %681 = vmatprep.mubr.msk.f32.mxu0 %vm204_vm0, %v189_v5  ;;  %776 = vmatprep.subr.bf16.mxu1 %v775_v12  ;;  %v192_v20 = vld [vmem:[%s993_s8 + $0x18] sm:$0xff]  ;;  %v320_v29 = vld [vmem:[#allocation2 + $0xe8] sm:$0xff]  ;;  %v321_v31 = vld [vmem:[#allocation2 + $0xf0] sm:$0xff] }
  0x32   : > { %770 = vmatpush3.bf16.msra.mxu0 %v767_v6  ;;  %v795_v30 = vpack.c.bf16 %v320_v29, %v319_v28  ;;  %v322_v32 = vld [vmem:[#allocation2 + $0xf8] sm:$0xff]  ;;  %v421_v34 = vld [vmem:[#allocation2 + $0x100] sm:$0xff]  ;;  %v422_v35 = vld [vmem:[#allocation2 + $0x108] sm:$0xff] }
  0x33   : > { %v799_v33 = vpack.c.bf16 %v322_v32, %v321_v31  ;;  %v423_v36 = vld [vmem:[#allocation2 + $0x110] sm:$0xff]  ;;  %v803_v37 = vpack.c.bf16 %v422_v35, %v421_v34  ;;  %v424_v38 = vld [vmem:[#allocation2 + $0x118] sm:$0xff]  ;;  %v425_v40 = vld [vmem:[#allocation2 + $0x120] sm:$0xff] }
  0x34   : > { %778 = vmatpush3.bf16.msra.mxu1 %v775_v12  ;;  %v807_v39 = vpack.c.bf16 %v424_v38, %v423_v36  ;;  %v426_v41 = vld [vmem:[#allocation2 + $0x128] sm:$0xff]  ;;  %v427_v43 = vld [vmem:[#allocation2 + $0x130] sm:$0xff]  ;;  %v428_v44 = vld [vmem:[#allocation2 + $0x138] sm:$0xff] }
  0x35   : > { %682 = vmatmul.mubr.msk.f32.vlgmr.msra.gmra.mrb[0].mxu0 %vm204_vm0, %v190_v15  ;;  %780 = vmatprep.subr.bf16.mxu1 %v779_v16  ;;  %v811_v42 = vpack.c.bf16 %v426_v41, %v425_v40  ;;  %v815_v45 = vpack.c.bf16 %v428_v44, %v427_v43  ;;  %v614_v46 = vld [vmem:[%s1022_s2] ss:$0 sm:$0xff]  ;;  %v430_v60 = vld [vmem:[#allocation2 + $0x148] sm:$0xff]  ;;  %v431_v62 = vld [vmem:[#allocation2 + $0x150] sm:$0xff] }
  0x36   : > { %684 = vmatprep.mubr.msk.f32.mxu0 %vm204_vm0, %v191_v17  ;;  %804 = vmatprep.subr.bf16.mxu0 %v803_v37  ;;  %v429_v59 = vld [vmem:[#allocation2 + $0x140] sm:$0xff]  ;;  %v432_v63 = vld [vmem:[#allocation2 + $0x158] sm:$0xff]  ;;  %v434_v2 = vld [vmem:[#allocation2 + $0x168] sm:$0xff] }
  0x37   : > { %806 = vmatpush3.bf16.msra.mxu0 %v803_v37  ;;  %v819_v61 = vpack.c.bf16 %v430_v60, %v429_v59  ;;  %v823_v0 = vpack.c.bf16 %v432_v63, %v431_v62  ;;  %v433_v1 = vld [vmem:[#allocation2 + $0x160] sm:$0xff]  ;;  %v435_v4 = vld [vmem:[#allocation2 + $0x170] sm:$0xff]  ;;  %v436_v5 = vld [vmem:[#allocation2 + $0x178] sm:$0xff] }
  0x38   : > { %782 = vmatpush3.bf16.msra.mxu1 %v779_v16  ;;  %808 = vmatprep.subr.bf16.mxu0 %v807_v39  ;;  %v827_v3 = vpack.c.bf16 %v434_v2, %v433_v1  ;;  %v831_v6 = vpack.c.bf16 %v436_v5, %v435_v4  ;;  %v620_v7 = vld [vmem:[%s1022_s2 + $0x1] ss:$0 sm:$0xff] }
  0x39   : > { %685 = vmatmul.mubr.msk.f32.gmra.mrb[2].mxu0 %vm204_vm0, %v192_v20  ;;  %784 = vmatprep.subr.bf16.mxu1 %v783_v21  ;;  %v622_v20 = vld [vmem:[%s1022_s2 + $0x2] ss:$0 sm:$0xff] }
  0x3b   : > { %810 = vmatpush3.bf16.msra.mxu0 %v807_v39 }
  0x3c   : > { %786 = vmatpush3.bf16.msra.mxu1 %v783_v21  ;;  %812 = vmatprep.subr.bf16.mxu0 %v811_v42 }
  0x3d   : > { %788 = vmatprep.subr.bf16.mxu1 %v787_v24 }
  0x3f   : > { %814 = vmatpush3.bf16.msra.mxu0 %v811_v42 }
  0x40   : > { %790 = vmatpush3.bf16.msra.mxu1 %v787_v24  ;;  %816 = vmatprep.subr.bf16.mxu0 %v815_v45 }
  0x41   : > { %792 = vmatprep.subr.bf16.mxu1 %v791_v27 }
  0x43   : > { %818 = vmatpush3.bf16.msra.mxu0 %v815_v45 }
  0x44   : > { %794 = vmatpush3.bf16.msra.mxu1 %v791_v27  ;;  %820 = vmatprep.subr.bf16.mxu0 %v819_v61 }
  0x45   : > { %796 = vmatprep.subr.bf16.mxu1 %v795_v30 }
  0x47   : > { %822 = vmatpush3.bf16.msra.mxu0 %v819_v61 }
  0x48   : > { %798 = vmatpush3.bf16.msra.mxu1 %v795_v30  ;;  %824 = vmatprep.subr.bf16.mxu0 %v823_v0 }
  0x49   : > { %800 = vmatprep.subr.bf16.mxu1 %v799_v33 }
  0x4b   : > { %826 = vmatpush3.bf16.msra.mxu0 %v823_v0 }
  0x4c   : > { %802 = vmatpush3.bf16.msra.mxu1 %v799_v33  ;;  %828 = vmatprep.subr.bf16.mxu0 %v827_v3 }
  0x4f   : > { %830 = vmatpush3.bf16.msra.mxu0 %v827_v3 }
  0x50   : > { %832 = vmatprep.subr.bf16.mxu0 %v831_v6 }
  0x53   : > { %834 = vmatpush3.bf16.msra.mxu0 %v831_v6 }
 0x108   : > { %v683_v47 = vpop.f32.mrb[0].mxu0 }
 0x109   : > { %v289_v48 = vadd.f32 %v683_v47, %v614_v46  ;;  %v283_v49 = vpop.f32.mrb[1].mxu0 }
 0x10a   : > { %v284_v50 = vadd.f32 %v614_v46, %v283_v49 }
 0x10c   : > { %856 = vtanh.f32 %v284_v50  ;;  %v686_v51 = vpop.f32.mrb[2].mxu0 }
 0x10d   : > { %858 = vtanh.f32 %v289_v48  ;;  %v299_v52 = vadd.f32 %v686_v51, %v614_v46  ;;  %v293_v53 = vpop.f32.mrb[3].mxu0 }
 0x10e   : > { %v294_v54 = vadd.f32 %v614_v46, %v293_v53 }
 0x110   : > { %860 = vtanh.f32 %v294_v54 }
 0x111   : > { %862 = vtanh.f32 %v299_v52 }
 0x116   : > { %v857_v55 = vpop.eup %856 }
 0x117   : > { %v859_v56 = vpop.eup %858  ;;  %719 = vmatprep.mubr.f32.mxu1 %v857_v55 }
 0x118   : > { %720 = vmatmul.mubr.f32.vlgmr.msra.gmra.mrb[0].mxu1 %v859_v56 }
 0x11a   : > { %v861_v57 = vpop.eup %860 }
 0x11b   : > { %v863_v58 = vpop.eup %862  ;;  %722 = vmatprep.mubr.f32.mxu1 %v861_v57 }
 0x11c   : > { %723 = vmatmul.mubr.f32.gmra.mrb[2].mxu1 %v863_v58 }
 0x1eb   : > { %v721_v8 = vpop.f32.mrb[0].mxu1 }
 0x1ec   : > { %v403_v9 = vadd.f32 %v721_v8, %v620_v7  ;;  %v397_v10 = vpop.f32.mrb[1].mxu1 }
 0x1ed   : > { %v398_v11 = vadd.f32 %v620_v7, %v397_v10 }
 0x1ef   : > { %864 = vtanh.f32 %v398_v11  ;;  %v724_v12 = vpop.f32.mrb[2].mxu1 }
 0x1f0   : > { %866 = vtanh.f32 %v403_v9  ;;  %v413_v13 = vadd.f32 %v724_v12, %v620_v7  ;;  %v407_v14 = vpop.f32.mrb[3].mxu1 }
 0x1f1   : > { %v408_v15 = vadd.f32 %v620_v7, %v407_v14 }
 0x1f3   : > { %868 = vtanh.f32 %v408_v15 }
 0x1f4   : > { %870 = vtanh.f32 %v413_v13 }
 0x1f9   : > { %v865_v16 = vpop.eup %864 }
 0x1fa   : > { %v867_v17 = vpop.eup %866  ;;  %757 = vmatprep.mubr.f32.mxu0 %v865_v16 }
 0x1fb   : > { %758 = vmatmul.mubr.f32.vlgmr.msra.gmra.mrb[4].mxu0 %v867_v17 }
 0x1fd   : > { %v869_v18 = vpop.eup %868 }
 0x1fe   : > { %v871_v19 = vpop.eup %870  ;;  %760 = vmatprep.mubr.f32.mxu0 %v869_v18 }
 0x1ff   : > { %761 = vmatmul.mubr.f32.gmra.mrb[6].mxu0 %v871_v19 }
 0x2ce   : > { %v759_v21 = vpop.f32.mrb[4].mxu0 }
 0x2cf   : > { %v511_v22 = vpop.f32.mrb[5].mxu0  ;;  %v517_v24 = vadd.f32 %v759_v21, %v622_v20 }
 0x2d0   : > { %v512_v23 = vadd.f32 %v622_v20, %v511_v22 }
 0x2d1   : > { %532 = vst.msk [vmem:[%s187_s18 + $0x8] sm:$0xff] %vm530_vm1, %v517_v24 }
 0x2d2   : > { %531 = vst.msk [vmem:[%s187_s18] sm:$0xff] %vm530_vm1, %v512_v23  ;;  %v762_v25 = vpop.f32.mrb[6].mxu0 }
 0x2d3   : > { %v521_v26 = vpop.f32.mrb[7].mxu0  ;;  %v527_v28 = vadd.f32 %v762_v25, %v622_v20 }
 0x2d4   : > { %v522_v27 = vadd.f32 %v622_v20, %v521_v26 }
 0x2d5   : > { %534 = vst.msk [vmem:[%s187_s18 + $0x18] sm:$0xff] %vm530_vm1, %v527_v28 }
 0x2d6   : > { %533 = vst.msk [vmem:[%s187_s18 + $0x10] sm:$0xff] %vm530_vm1, %v522_v27 }
 0x2d7 PF: > { %s14_s12 = sadd.s32 1, %s910_s12  }
 0x2d8   : > { %p11_p3 = scmp.ge.s32.totalorder %s14_s12, 4  }
 0x2da   :  { %13 = sbr.rel (!%p11_p3) target bundleno = 1 (0x1), region = 71 }
 0x2e1   :  { %557 = vsyncpa [#allocation3], 1 }
 0x2e2   :  { %559 = vsyncpa [#allocation3 + $0x1], 1 }

</bundles_post_ra>
